<compile_context>
chip_gen: v6e
topology: v6e:2x2x1
jax: 0.10.0
libtpu: 0.0.40
codegen_flags: <defaults>
</compile_context>

<pallas_src>
import functools

import jax
import jax.numpy as jnp
from jax.experimental import pallas as pl
from jax.experimental.pallas import tpu as pltpu


_NEG_SLOPE = 0.01   # PyTorch F.leaky_relu default negative_slope
_P_DROP = 0.01      # nn.Dropout(p=0.01)


def _round_up(a, m):
    return ((a + m - 1) // m) * m


def _dropout_bits(shape, row_offset, seed_u32):
    """Per-element uint32 hash of (global_row, col, seed).

    Portable (plain integer VPU ops) — lowers on TPU Mosaic and in interpret
    mode alike, unlike pltpu.prng_seed / prng_random_bits.
    """
    r = (jax.lax.broadcasted_iota(jnp.int32, shape, 0) + row_offset).astype(jnp.uint32)
    c = jax.lax.broadcasted_iota(jnp.int32, shape, 1).astype(jnp.uint32)
    bits = (r * jnp.uint32(0x9E3779B1)
            + c * jnp.uint32(0x85EBCA77)
            + seed_u32 * jnp.uint32(0x27D4EB2F))
    # murmur3-style finalizer for avalanche
    bits = bits ^ (bits >> 16)
    bits = bits * jnp.uint32(0x7FEB352D)
    bits = bits ^ (bits >> 15)
    bits = bits * jnp.uint32(0x846CA68B)
    bits = bits ^ (bits >> 16)
    return bits


def _advantage_kernel(*refs, training: bool, p_drop: float, neg_slope: float,
                      tile_b: int):
    if training:
        seed_ref, x_ref, w1_ref, b1_ref, w2_ref, b2_ref, o_ref = refs
    else:
        x_ref, w1_ref, b1_ref, w2_ref, b2_ref, o_ref = refs

    # ---- Linear 1 (MXU, f32 accumulation) + bias ----
    h = jnp.dot(x_ref[...], w1_ref[...], preferred_element_type=jnp.float32)
    h = h + b1_ref[...]                      # (1, H) broadcast over batch rows

    # ---- LeakyReLU ----
    h = jnp.where(h > 0, h, neg_slope * h)

    # ---- Dropout(p) — training mode only ----
    if training:
        # TODO(synk): PRNG stream differs from torch.nn.Dropout (hash-based
        # mask); semantics match: drop w.p. p, scale survivors by 1/(1-p).
        row_off = pl.program_id(0) * tile_b          # per-tile distinct stream
        bits = _dropout_bits(h.shape, row_off, seed_ref[0].astype(jnp.uint32))
        thresh = jnp.uint32(int(round(p_drop * 4294967296.0)))
        keep = bits >= thresh                        # integer compare, no f32 convert
        h = jnp.where(keep, h * (1.0 / (1.0 - p_drop)), 0.0)

    # ---- Linear 2 (MXU) + bias; lane-dense (padded-to-128) output store ----
    y = jnp.dot(h, w2_ref[...], preferred_element_type=jnp.float32)
    o_ref[...] = (y + b2_ref[...]).astype(o_ref.dtype)


def advantage_estimate(x, w1, b1, w2, b2, *, training=False, seed=0,
                       p_drop=_P_DROP, neg_slope=_NEG_SLOPE, block_b=256):
    """Fused dueling-advantage MLP forward.

    x: (B, F_in). w1: (F_in, H). b1: (H,). w2: (H, F_out). b2: (F_out,).
    Weights are pre-transposed relative to torch.nn.Linear's (out, in) layout.
    """
    B, F_in = x.shape
    H = w1.shape[1]
    F_out = w2.shape[1]

    # ---- Lane-dense output: pad F_out up to a multiple of 128 with zeros ----
    N_pad = _round_up(F_out, 128)
    w2_p = jnp.zeros((H, N_pad), w2.dtype).at[:, :F_out].set(w2)
    b2_p = jnp.zeros((1, N_pad), b2.dtype).at[:, :F_out].set(b2.reshape(1, F_out))
    b1_2d = b1.reshape(1, H)

    # ---- Batch tiling: TB rows per grid step (multiple of 8), pad B to it ----
    TB = block_b if B >= block_b else _round_up(B, 8)
    B_pad = _round_up(B, TB)
    if B_pad != B:
        x = jnp.zeros((B_pad, F_in), x.dtype).at[:B, :].set(x)

    grid = (B_pad // TB,)

    # Weights/biases stay resident across grid steps (index_map -> (0, 0)).
    x_spec = pl.BlockSpec((TB, F_in), lambda i, *_: (i, 0))
    w1_spec = pl.BlockSpec((F_in, H), lambda i, *_: (0, 0))
    b1_spec = pl.BlockSpec((1, H), lambda i, *_: (0, 0))
    w2_spec = pl.BlockSpec((H, N_pad), lambda i, *_: (0, 0))
    b2_spec = pl.BlockSpec((1, N_pad), lambda i, *_: (0, 0))
    out_spec = pl.BlockSpec((TB, N_pad), lambda i, *_: (i, 0))

    kernel = functools.partial(
        _advantage_kernel, training=training, p_drop=p_drop,
        neg_slope=neg_slope, tile_b=TB)

    grid_spec = pltpu.PrefetchScalarGridSpec(
        num_scalar_prefetch=1 if training else 0,   # seed only in training mode
        grid=grid,
        in_specs=[x_spec, w1_spec, b1_spec, w2_spec, b2_spec],
        out_specs=out_spec,
    )

    args = (x, w1, b1_2d, w2_p, b2_p)
    if training:
        args = (jnp.asarray([seed], dtype=jnp.int32),) + args

    y_pad = pl.pallas_call(
        kernel,
        out_shape=jax.ShapeDtypeStruct((B_pad, N_pad), jnp.float32),
        grid_spec=grid_spec,
        compiler_params=pltpu.CompilerParams(
            dimension_semantics=("parallel",),       # batch tiles split across TCs (v7x)
            vmem_limit_bytes=32 * 1024 * 1024,       # tiny tiles; safe on v5e/v6e/v7x
        ),
    )(*args)

    return y_pad[:B, :F_out]


def reference_forward(x, w1, b1, w2, b2, neg_slope=_NEG_SLOPE):
    hp = jax.lax.Precision.HIGHEST
    h = jnp.dot(x, w1, precision=hp) + b1
    h = jnp.where(h > 0, h, neg_slope * h)
    return jnp.dot(h, w2, precision=hp) + b2


if __name__ == "__main__":
    # Small shapes consistent with the module: Linear(F_in -> 128 -> F_out)
    B, F_in, HID, F_out = 8, 32, 128, 8

    key = jax.random.PRNGKey(0)
    kx, k1, k2, k3, k4 = jax.random.split(key, 5)

    x = jax.random.normal(kx, (B, F_in), dtype=jnp.float32)
    w1 = jax.random.normal(k1, (F_in, HID), dtype=jnp.float32) * (1.0 / F_in ** 0.5)
    b1 = jax.random.normal(k2, (HID,), dtype=jnp.float32) * 0.01
    w2 = jax.random.normal(k3, (HID, F_out), dtype=jnp.float32) * (1.0 / HID ** 0.5)
    b2 = jax.random.normal(k4, (F_out,), dtype=jnp.float32) * 0.01

    # Eval-mode forward (dropout = identity), matches module.eval() behaviour.
    y = jax.block_until_ready(advantage_estimate(x, w1, b1, w2, b2, training=False))
    y_ref = reference_forward(x, w1, b1, w2, b2)
    assert y.shape == (B, F_out)
    assert jnp.allclose(y, y_ref, atol=1e-4, rtol=1e-4), "mismatch vs JAX reference"

    # Multi-tile grid path (batch padded & tiled), still eval mode.
    xb = jax.random.normal(kx, (40, F_in), dtype=jnp.float32)
    yb = jax.block_until_ready(
        advantage_estimate(xb, w1, b1, w2, b2, training=False, block_b=16))
    yb_ref = reference_forward(xb, w1, b1, w2, b2)
    assert yb.shape == (40, F_out)
    assert jnp.allclose(yb, yb_ref, atol=1e-4, rtol=1e-4), "mismatch (tiled path)"

    # Training-mode (hash-based dropout) path.
    y_train = jax.block_until_ready(
        advantage_estimate(x, w1, b1, w2, b2, training=True, seed=123))
    assert y_train.shape == (B, F_out)
    assert bool(jnp.all(jnp.isfinite(y_train)))

    print("KERNEL_OK")
</pallas_src>

<mosaic_0001>
module attributes {stable_mosaic.version = 11 : i64} {
  func.func @_advantage_kernel(%arg0: i32, %arg1: memref<8x32xf32, #tpu.memory_space<vmem>>, %arg2: memref<32x128xf32, #tpu.memory_space<vmem>>, %arg3: memref<1x128xf32, #tpu.memory_space<vmem>>, %arg4: memref<128x128xf32, #tpu.memory_space<vmem>>, %arg5: memref<1x128xf32, #tpu.memory_space<vmem>>, %arg6: memref<8x128xf32, #tpu.memory_space<vmem>>) attributes {dimension_semantics = [#tpu.dimension_semantics<parallel>], iteration_bounds = array<i64: 1>, scalar_prefetch = 0 : i64, scratch_operands = 0 : i64, tpu.core_type = #tpu.core_type<tc>, window_params = [{transform_indices = @transform_0, window_bounds = array<i64: 8, 32>}, {pipeline_mode = #tpu.pipeline_mode<synchronous>, transform_indices = @transform_1, window_bounds = array<i64: 32, 128>}, {pipeline_mode = #tpu.pipeline_mode<synchronous>, transform_indices = @transform_2, window_bounds = array<i64: 1, 128>}, {pipeline_mode = #tpu.pipeline_mode<synchronous>, transform_indices = @transform_3, window_bounds = array<i64: 128, 128>}, {pipeline_mode = #tpu.pipeline_mode<synchronous>, transform_indices = @transform_4, window_bounds = array<i64: 1, 128>}, {transform_indices = @transform_5, window_bounds = array<i64: 8, 128>}]} {
    %c0 = arith.constant 0 : index
    %c0_0 = arith.constant 0 : index
    %0 = vector.load %arg1[%c0, %c0_0] : memref<8x32xf32, #tpu.memory_space<vmem>>, vector<8x32xf32>
    %c0_1 = arith.constant 0 : index
    %c0_2 = arith.constant 0 : index
    %1 = vector.load %arg2[%c0_1, %c0_2] : memref<32x128xf32, #tpu.memory_space<vmem>>, vector<32x128xf32>
    %cst = arith.constant dense<0.000000e+00> : vector<8x128xf32>
    %2 = tpu.matmul %0, %1, %cst {dimension_numbers = #tpu.dot_dimension_numbers<[1], [0], [0], [1], [0, 0, 1, 1], [], []>} : vector<8x32xf32>, vector<32x128xf32>, vector<8x128xf32> -> vector<8x128xf32>
    %c0_3 = arith.constant 0 : index
    %c0_4 = arith.constant 0 : index
    %3 = vector.load %arg3[%c0_3, %c0_4] : memref<1x128xf32, #tpu.memory_space<vmem>>, vector<1x128xf32>
    %4 = vector.broadcast %3 : vector<1x128xf32> to vector<8x128xf32>
    %5 = arith.addf %2, %4 : vector<8x128xf32>
    %cst_5 = arith.constant 0.000000e+00 : f32
    %6 = vector.broadcast %cst_5 : f32 to vector<8x128xf32>
    %7 = arith.cmpf ogt, %5, %6 : vector<8x128xf32>
    %cst_6 = arith.constant 0.00999999977 : f32
    %8 = vector.broadcast %cst_6 : f32 to vector<8x128xf32>
    %9 = arith.mulf %8, %5 : vector<8x128xf32>
    %10 = arith.select %7, %5, %9 : vector<8x128xi1>, vector<8x128xf32>
    %c0_7 = arith.constant 0 : index
    %c0_8 = arith.constant 0 : index
    %11 = vector.load %arg4[%c0_7, %c0_8] : memref<128x128xf32, #tpu.memory_space<vmem>>, vector<128x128xf32>
    %cst_9 = arith.constant dense<0.000000e+00> : vector<8x128xf32>
    %12 = tpu.matmul %10, %11, %cst_9 {dimension_numbers = #tpu.dot_dimension_numbers<[1], [0], [0], [1], [0, 0, 1, 1], [], []>} : vector<8x128xf32>, vector<128x128xf32>, vector<8x128xf32> -> vector<8x128xf32>
    %c0_10 = arith.constant 0 : index
    %c0_11 = arith.constant 0 : index
    %13 = vector.load %arg5[%c0_10, %c0_11] : memref<1x128xf32, #tpu.memory_space<vmem>>, vector<1x128xf32>
    %14 = vector.broadcast %13 : vector<1x128xf32> to vector<8x128xf32>
    %15 = arith.addf %12, %14 : vector<8x128xf32>
    %c0_12 = arith.constant 0 : index
    %c0_13 = arith.constant 0 : index
    %16 = vector.load %arg6[%c0_12, %c0_13] : memref<8x128xf32, #tpu.memory_space<vmem>>, vector<8x128xf32>
    tpu.vector_store %arg6[%c0_12, %c0_13], %15 {strides = array<i32>} : memref<8x128xf32, #tpu.memory_space<vmem>>, vector<8x128xf32>,
    return
  }
  func.func @transform_0(%arg0: i32) -> (i32, i32) {
    %c0_i32 = arith.constant 0 : i32
    %c0_i32_0 = arith.constant 0 : i32
    return %arg0, %c0_i32 : i32, i32
  }
  func.func @transform_1(%arg0: i32) -> (i32, i32) {
    %c0_i32 = arith.constant 0 : i32
    %c0_i32_0 = arith.constant 0 : i32
    %c0_i32_1 = arith.constant 0 : i32
    return %c0_i32, %c0_i32_0 : i32, i32
  }
  func.func @transform_2(%arg0: i32) -> (i32, i32) {
    %c0_i32 = arith.constant 0 : i32
    %c0_i32_0 = arith.constant 0 : i32
    %c0_i32_1 = arith.constant 0 : i32
    return %c0_i32, %c0_i32_0 : i32, i32
  }
  func.func @transform_3(%arg0: i32) -> (i32, i32) {
    %c0_i32 = arith.constant 0 : i32
    %c0_i32_0 = arith.constant 0 : i32
    %c0_i32_1 = arith.constant 0 : i32
    return %c0_i32, %c0_i32_0 : i32, i32
  }
  func.func @transform_4(%arg0: i32) -> (i32, i32) {
    %c0_i32 = arith.constant 0 : i32
    %c0_i32_0 = arith.constant 0 : i32
    %c0_i32_1 = arith.constant 0 : i32
    return %c0_i32, %c0_i32_0 : i32, i32
  }
  func.func @transform_5(%arg0: i32) -> (i32, i32) {
    %c0_i32 = arith.constant 0 : i32
    %c0_i32_0 = arith.constant 0 : i32
    return %arg0, %c0_i32 : i32, i32
  }
}

</mosaic_0001>

<bundles_post_ra>
// kernel: tpu_custom_call.1
= control target key start
LH: loop header
LB: loop body
LE: loop exit
PB: predicated region body
PF: predicated region fallthrough
CT: control target
= control target key end

     0   :  { %10 = vsyncpa [#allocation3], 0  ;;  %s502_s0 = inlined_call_operand.hbm [shape: f32[8,32], index: 0, kind: input, shape index: {}]   ;;  %s503_s1 = inlined_call_operand.hbm [shape: f32[32,128], index: 1, kind: input, shape index: {}]   ;;  %s504_s2 = inlined_call_operand.vmem [shape: f32[1,128], index: 2, kind: input, shape index: {}]   ;;  %s505_s3 = inlined_call_operand.hbm [shape: f32[128,128], index: 3, kind: input, shape index: {}]   ;;  %s506_s4 = inlined_call_operand.vmem [shape: f32[1,128], index: 4, kind: input, shape index: {}]   ;;  %s507_s5 = inlined_call_operand.hbm [shape: f32[8,128], index: 5, kind: output, shape index: {}]  }
   0x1   :  { %11 = vsyncpa [#allocation6], 0 }
   0x2   :  { %12 = vsyncpa [#allocation4], 0  ;;  %s424_s18 = smov [#allocation5]  }
   0x3   :  { %s28_s19 = sshll.u32 %s424_s18, 4  ;;  %s29_s19 = int_to_ptr.vmem [resolvable:$true] %s28_s19 }
   0x4   :  { %s346_s20 = scalar_lea.vmem %s29_s19, 512  ;;  %p351_p1 = scmp.lt.s32.totalorder %s29_s19, %s29_s19 }
   0x5   :  { %p347_p0 = scmp.ne.s32.totalorder %s29_s19, %s346_s20  ;;  %p352_p2 = scmp.lt.s32.totalorder %s346_s20, %s346_s20 }
   0x7   :  { %p353_p3 = por %p352_p2, %p351_p1 }
   0x9   :  { %p354_p4 = pnand %p353_p3, %p347_p0 }
   0xb   :  { %357 = shalt.err (!%p354_p4)
}
   0xc   :  { %s425_s21 = smov 128   ;;  %s426_s22 = smov 8  }
   0xd   :  { %34 = dma.hbm_to_vmem [thread:$0]  %s503_s1, 512, %s29_s19, [#allocation6], %s425_s21, %s425_s21, %s426_s22  }
   0xe   :  { %s427_s25 = smov [#allocation2]   ;;  %s428_s27 = smov [#allocation7]  }
   0xf   :  { %s19_s26 = sshll.u32 %s427_s25, 4  ;;  %s42_s28 = sshll.u32 %s428_s27, 4  ;;  %s20_s26 = int_to_ptr.vmem [resolvable:$true] %s19_s26  ;;  %s43_s28 = int_to_ptr.vmem [resolvable:$true] %s42_s28 }
  0x10   :  { %s366_s29 = scalar_lea.vmem %s20_s26, 128  ;;  %p371_p6 = scmp.lt.s32.totalorder %s20_s26, %s20_s26 }
  0x11   :  { %p367_p5 = scmp.ne.s32.totalorder %s20_s26, %s366_s29  ;;  %p372_p7 = scmp.lt.s32.totalorder %s366_s29, %s366_s29 }
  0x13   :  { %p373_p8 = por %p372_p7, %p371_p6 }
  0x15   :  { %p374_p9 = pnand %p373_p8, %p367_p5 }
  0x17   :  { %377 = shalt.err (!%p374_p9)
}
  0x18   :  { %22 = dma.hbm_to_vmem [thread:$0]  %s502_s0, 128, %s20_s26, [#allocation3]  }
  0x19   :  { %s386_s7 = scalar_lea.vmem %s43_s28, 2048  ;;  %p391_p11 = scmp.lt.s32.totalorder %s43_s28, %s43_s28 }
  0x1a   :  { %p387_p10 = scmp.ne.s32.totalorder %s43_s28, %s386_s7  ;;  %p392_p12 = scmp.lt.s32.totalorder %s386_s7, %s386_s7 }
  0x1c   :  { %p393_p13 = por %p392_p12, %p391_p11 }
  0x1e   :  { %p394_p0 = pnand %p393_p13, %p387_p10 }
  0x20   :  { %397 = shalt.err (!%p394_p0)
}
  0x21   :  { %48 = dma.hbm_to_vmem [thread:$0]  %s505_s3, 2048, %s43_s28, [#allocation6], %s425_s21, %s425_s21, %s426_s22  }
  0x22   :  { %418 = dma.done.wait [#allocation3], 128  }
  0x23   :  { %419 = vsyncadd [#allocation3], 4294967168 }
  0x24   :  { %420 = dma.done.wait [#allocation6], 2560  }
  0x25   :  { %421 = vsyncadd [#allocation6], 4294964736  ;;  %v429_v0 = vmov 0.0   ;;  %vm430_vm0 = vmmov 0   ;;  %v64_v1 = vld [vmem:[#allocation5 + $0x18] sm:$0xff]  ;;  %v63_v2 = vld [vmem:[#allocation5 + $0x10] sm:$0xff] }
  0x26   :  { %284 = vmatprep.subr.mxu0 %v429_v0  ;;  %292 = vmatprep.mubr.msk.f32.mxu0 %vm430_vm0, %v429_v0  ;;  %v164_v3 = vld [vmem:[#allocation7 + $0x78] sm:$0xff]  ;;  %v62_v4 = vld [vmem:[#allocation5 + $0x8] sm:$0xff]  ;;  %v163_v5 = vld [vmem:[#allocation7 + $0x70] sm:$0xff]  ;;  %vm72_vm1 = vcmask 261120   ;;  %s431_s11 = smov [#allocation8]  }
  0x27   :  { %295 = vmatprep.subr.mxu1 %v429_v0  ;;  %327 = vmatprep.mubr.msk.f32.mxu1 %vm430_vm0, %v429_v0  ;;  %v162_v6 = vld [vmem:[#allocation7 + $0x68] sm:$0xff]  ;;  %v61_v7 = vld [vmem:[#allocation5] sm:$0xff]  ;;  %v60_v8 = vld [vmem:[#allocation2] sm:$0xff]  ;;  %s249_s12 = sshll.u32 %s431_s11, 4  ;;  %s250_s12 = int_to_ptr.vmem [resolvable:$true] %s249_s12 }
  0x28   :  { %285 = vmatpush3.msra.mxu0 %v64_v1  ;;  %296 = vmatpush3.msra.mxu1 %v164_v3  ;;  %v161_v9 = vld [vmem:[#allocation7 + $0x60] sm:$0xff]  ;;  %v160_v10 = vld [vmem:[#allocation7 + $0x58] sm:$0xff]  ;;  %v159_v11 = vld [vmem:[#allocation7 + $0x50] sm:$0xff]  ;;  %s398_s13 = scalar_lea.vmem %s250_s12, 128  ;;  %p403_p2 = scmp.lt.s32.totalorder %s250_s12, %s250_s12 }
  0x29   :  { %286 = vmatprep.subr.mxu0 %v429_v0  ;;  %297 = vmatprep.subr.mxu1 %v429_v0  ;;  %v158_v12 = vld [vmem:[#allocation7 + $0x48] sm:$0xff]  ;;  %v157_v13 = vld [vmem:[#allocation7 + $0x40] sm:$0xff]  ;;  %v156_v14 = vld [vmem:[#allocation7 + $0x38] sm:$0xff]  ;;  %p399_p1 = scmp.ne.s32.totalorder %s250_s12, %s398_s13  ;;  %p404_p3 = scmp.lt.s32.totalorder %s398_s13, %s398_s13 }
  0x2a   :  { %287 = vmatpush3.msra.mxu0 %v63_v2  ;;  %298 = vmatpush3.msra.mxu1 %v163_v5  ;;  %v155_v15 = vld [vmem:[#allocation7 + $0x30] sm:$0xff]  ;;  %v154_v16 = vld [vmem:[#allocation7 + $0x28] sm:$0xff]  ;;  %v153_v17 = vld [vmem:[#allocation7 + $0x20] sm:$0xff] }
  0x2b   :  { %288 = vmatprep.subr.mxu0 %v429_v0  ;;  %299 = vmatprep.subr.mxu1 %v429_v0  ;;  %v152_v18 = vld [vmem:[#allocation7 + $0x18] sm:$0xff]  ;;  %v151_v19 = vld [vmem:[#allocation7 + $0x10] sm:$0xff]  ;;  %v150_v20 = vld [vmem:[#allocation7 + $0x8] sm:$0xff]  ;;  %p405_p4 = por %p404_p3, %p403_p2 }
  0x2c   :  { %289 = vmatpush3.msra.mxu0 %v62_v4  ;;  %300 = vmatpush3.msra.mxu1 %v162_v6  ;;  %v149_v21 = vld [vmem:[#allocation7] sm:$0xff]  ;;  %v259_v22 = vld [vmem:[%s504_s2] ss:$0 sm:$0xff] }
  0x2d   :  { %290 = vmatprep.subr.mxu0 %v429_v0  ;;  %301 = vmatprep.subr.mxu1 %v429_v0  ;;  %v261_v28 = vld [vmem:[%s506_s4] ss:$0 sm:$0xff]  ;;  %p406_p5 = pnand %p405_p4, %p399_p1 }
  0x2e   :  { %291 = vmatpush3.msra.mxu0 %v61_v7  ;;  %302 = vmatpush3.msra.mxu1 %v161_v9 }
  0x2f   :  { %293 = vmatmul.mubr.msk.f32.vlgmr.msra.gmra.mxu0 %vm72_vm1, %v60_v8  ;;  %303 = vmatprep.subr.mxu1 %v429_v0 }
  0x30   :  { %304 = vmatpush3.msra.mxu1 %v160_v10 }
  0x31   :  { %305 = vmatprep.subr.mxu1 %v429_v0 }
  0x32   :  { %306 = vmatpush3.msra.mxu1 %v159_v11 }
  0x33   :  { %307 = vmatprep.subr.mxu1 %v429_v0 }
  0x34   :  { %308 = vmatpush3.msra.mxu1 %v158_v12 }
  0x35   :  { %309 = vmatprep.subr.mxu1 %v429_v0 }
  0x36   :  { %310 = vmatpush3.msra.mxu1 %v157_v13 }
  0x37   :  { %311 = vmatprep.subr.mxu1 %v429_v0 }
  0x38   :  { %312 = vmatpush3.msra.mxu1 %v156_v14 }
  0x39   :  { %313 = vmatprep.subr.mxu1 %v429_v0 }
  0x3a   :  { %314 = vmatpush3.msra.mxu1 %v155_v15 }
  0x3b   :  { %315 = vmatprep.subr.mxu1 %v429_v0 }
  0x3c   :  { %316 = vmatpush3.msra.mxu1 %v154_v16 }
  0x3d   :  { %317 = vmatprep.subr.mxu1 %v429_v0 }
  0x3e   :  { %318 = vmatpush3.msra.mxu1 %v153_v17 }
  0x3f   :  { %319 = vmatprep.subr.mxu1 %v429_v0 }
  0x40   :  { %320 = vmatpush3.msra.mxu1 %v152_v18 }
  0x41   :  { %321 = vmatprep.subr.mxu1 %v429_v0 }
  0x42   :  { %322 = vmatpush3.msra.mxu1 %v151_v19 }
  0x43   :  { %323 = vmatprep.subr.mxu1 %v429_v0 }
  0x44   :  { %324 = vmatpush3.msra.mxu1 %v150_v20 }
  0x45   :  { %325 = vmatprep.subr.mxu1 %v429_v0 }
  0x46   :  { %326 = vmatpush3.msra.mxu1 %v149_v21 }
  0xef   :  { %v142_v23 = vpop.f32.mrf.mxu0 }
  0xf0   :  { %v143_v24 = vadd.f32 %v259_v22, %v142_v23 }
  0xf1   :  { %v294_v25 = vpop.f32.mrf.mxu0 }
  0xf2   :  { %v147_v26 = vmul.f32 0.01, %v143_v24  ;;  %vm146_vm2 = vcmp.gt.f32.partialorder %v143_v24, 0.0 }
  0xf4   :  { %v148_v27 = vsel %vm146_vm2, %v143_v24, %v147_v26 }
  0xf5   :  { %328 = vmatmul.mubr.f32.vlgmr.msra.gmra.mxu1 %v148_v27 }
 0x1b5   :  { %v238_v29 = vpop.f32.mrf.mxu1 }
 0x1b6   :  { %v239_v30 = vadd.f32 %v261_v28, %v238_v29 }
 0x1b7   :  { %v329_v31 = vpop.f32.mrf.mxu1 }
 0x1b8   :  { %242 = vst [vmem:[#allocation8] sm:$0xff] %v239_v30 }
 0x1b9   :  { %409 = shalt.err (!%p406_p5)
}
 0x1ba   :  { %252 = dma.vmem_to_hbm [thread:$0]  %s250_s12, 128, %s507_s5, [#allocation4]  }
 0x1bb   :  { %422 = dma.done.wait [#allocation4], 128  }
 0x1bc   :  { %423 = vsyncadd [#allocation4], 4294967168 }
 0x1bd   :  { %256 = vsyncpa [#allocation3], 1 }
 0x1be   :  { %257 = vsyncpa [#allocation6], 1 }
 0x1bf   :  { %258 = vsyncpa [#allocation4], 1 }

</bundles_post_ra>
